<compile_context>
chip_gen: v5e
topology: v5e:2x2
jax: 0.10.0
libtpu: 0.0.40
codegen_flags: <defaults>
</compile_context>

<pallas_src>
import jax
import jax.numpy as jnp
from jax.experimental import pallas as pl
from jax.experimental.pallas import tpu as pltpu


def autoencoder_kernel(x_ref, w1_ref, b1_ref, w2_ref, b2_ref, o_ref):
    """Fused forward pass: sigmoid(sigmoid(x @ W1 + b1) @ W2 + b2).

    x_ref  : (tb, num_pad)    bf16 input tile
    w1_ref : (num_pad, k_pad) bf16 encoder weight (pre-transposed, zero-padded)
    b1_ref : (1, k_pad)       f32 encoder bias (zero-padded)
    w2_ref : (k_pad, num_pad) bf16 decoder weight (pre-transposed, zero-padded)
    b2_ref : (1, num_pad)     f32 decoder bias (zero-padded)
    o_ref  : (tb, num_pad)    output tile (bf16 by default)
    """
    # .astype is a no-op when x is already bf16; keeps the kernel dtype-robust.
    x = x_ref[...].astype(jnp.bfloat16)

    # Encoder: Linear(num -> k_pad) + sigmoid.  bf16 MXU, f32 accumulation.
    en = jnp.dot(x, w1_ref[...], preferred_element_type=jnp.float32) + b1_ref[...]
    en = jax.nn.sigmoid(en)

    # Decoder: Linear(k_pad -> num_pad) + sigmoid.
    # Padded lanes of `en` are sigmoid(0)=0.5 but hit exactly-zero W2 rows.
    out = jnp.dot(en.astype(jnp.bfloat16), w2_ref[...],
                  preferred_element_type=jnp.float32) + b2_ref[...]
    out = jax.nn.sigmoid(out)

    o_ref[...] = out.astype(o_ref.dtype)


def _round_up(v, m):
    return ((v + m - 1) // m) * m


def prepare_params(g_weight, g_bias, h_weight, h_bias, *, lane=128):
    """One-time weight layout prep (do NOT call per forward).

    g_weight : (k, num) PyTorch-layout encoder weight      g_bias : (k,)
    h_weight : (num, k) PyTorch-layout decoder weight      h_bias : (num,)

    Returns (w1, b1, w2, b2):
      w1 : (num_pad, k_pad) bf16    b1 : (1, k_pad)   f32
      w2 : (k_pad, num_pad) bf16    b2 : (1, num_pad) f32
    Both k and num are padded to multiples of `lane` (128) with exact zeros so
    padded rows/columns contribute nothing (padded W2 rows zero, padded output
    columns sliced off by the wrapper).
    """
    k, num = g_weight.shape
    k_pad = _round_up(k, lane)
    num_pad = _round_up(num, lane)

    w1 = jnp.zeros((num_pad, k_pad), jnp.bfloat16)
    w1 = w1.at[:num, :k].set(g_weight.T.astype(jnp.bfloat16))

    b1 = jnp.zeros((1, k_pad), jnp.float32)
    b1 = b1.at[:, :k].set(g_bias.astype(jnp.float32))

    # Padded rows MUST be exactly zero so padded activations contribute nothing.
    w2 = jnp.zeros((k_pad, num_pad), jnp.bfloat16)
    w2 = w2.at[:k, :num].set(h_weight.T.astype(jnp.bfloat16))

    b2 = jnp.zeros((1, num_pad), jnp.float32)
    b2 = b2.at[:, :num].set(h_bias.astype(jnp.float32))
    return w1, b1, w2, b2


def _tpu_generation():
    """Return (is_v7x, vmem_limit_bytes) for the attached TPU generation."""
    kind = ""
    try:
        kind = str(jax.devices()[0].device_kind).lower()
    except Exception:
        pass
    is_v7x = ("v7" in kind) or ("7x" in kind)
    # v7x: 64 MiB physical VMEM per TC -> 40 MiB scoped leaves headroom.
    # v5e/v6e: 128 MiB physical -> 64 MiB scoped is comfortable.
    vmem_limit = (40 << 20) if is_v7x else (64 << 20)
    return is_v7x, vmem_limit


def _pick_tile_b(B, num_pad, k_pad, x_bytes, out_bytes, *, want_min_tiles,
                 vmem_limit_bytes):
    """Batch tile height from a VMEM byte budget (not a fixed cap)."""
    # Resident (single-buffered) weights + biases.
    weight_bytes = 2 * num_pad * k_pad * 2 + 4 * (k_pad + num_pad)
    budget = int(vmem_limit_bytes * 0.75) - weight_bytes
    # Per-row cost: double-buffered x + out tiles plus rough f32 activation temps.
    per_row = (2 * num_pad * x_bytes + 2 * num_pad * out_bytes
               + 4 * (k_pad + 2 * num_pad))
    rows_by_vmem = max(8, budget // per_row)
    # Target ~2 MiB of x per tile to amortize the ~0.35 us per-grid-step overhead.
    rows_by_target = max(8, (2 << 20) // max(1, num_pad * x_bytes))
    tile_b = min(B, rows_by_target, rows_by_vmem)
    # v7x has 2 TensorCores: keep at least `want_min_tiles` grid steps.
    if want_min_tiles > 1 and B > 8:
        tile_b = min(tile_b, -(-B // want_min_tiles))
    if tile_b >= B:
        return B                       # single full-height tile: always legal
    return max(8, (tile_b // 8) * 8)   # (8, 128) block constraint


def autoencoder_forward(x, w1, b1, w2, b2, *, out_dtype=None):
    """Pallas forward wrapper.

    x  : (B, num) — bf16 preferred (halves HBM traffic); f32 also accepted.
    w1/b1/w2/b2 : outputs of prepare_params (laid out / padded / bf16).
    returns (B, num) in `out_dtype` (default: x.dtype).
    """
    B, num = x.shape
    num_pad, k_pad = w1.shape
    assert w2.shape == (k_pad, num_pad)
    out_dtype = jnp.dtype(out_dtype or x.dtype)

    if num != num_pad:
        # Padded input features hit exactly-zero W1 rows -> no effect.
        x = jnp.pad(x, ((0, 0), (0, num_pad - num)))

    is_v7x, vmem_limit = _tpu_generation()
    tile_b = _pick_tile_b(B, num_pad, k_pad, x.dtype.itemsize, out_dtype.itemsize,
                          want_min_tiles=2 if is_v7x else 1,
                          vmem_limit_bytes=vmem_limit)
    grid = (pl.cdiv(B, tile_b),)   # ragged last tile is fine: rows independent

    def run(single_buffer_weights):
        # Constant-index resident operands don't need double buffering.
        w_kwargs = ({"pipeline_mode": pl.Buffered(1)}
                    if single_buffer_weights else {})
        return pl.pallas_call(
            autoencoder_kernel,
            out_shape=jax.ShapeDtypeStruct((B, num_pad), out_dtype),
            grid_spec=pltpu.PrefetchScalarGridSpec(
                num_scalar_prefetch=0,
                grid=grid,
                in_specs=[
                    pl.BlockSpec((tile_b, num_pad), lambda i: (i, 0)),          # x tile
                    pl.BlockSpec((num_pad, k_pad), lambda i: (0, 0), **w_kwargs),  # W1
                    pl.BlockSpec((1, k_pad), lambda i: (0, 0), **w_kwargs),        # b1
                    pl.BlockSpec((k_pad, num_pad), lambda i: (0, 0), **w_kwargs),  # W2
                    pl.BlockSpec((1, num_pad), lambda i: (0, 0), **w_kwargs),      # b2
                ],
                out_specs=pl.BlockSpec((tile_b, num_pad), lambda i: (i, 0)),
            ),
            compiler_params=pltpu.CompilerParams(
                dimension_semantics=("parallel",),
                vmem_limit_bytes=vmem_limit,
            ),
        )(x, w1, b1, w2, b2)

    try:
        out = run(True)
    except Exception:
        # Fallback if this jax build rejects single-buffered pipeline_mode.
        out = run(False)

    if num != num_pad:
        out = out[:, :num]
    return out


def reference_forward(x, g_weight, g_bias, h_weight, h_bias):
    en = jax.nn.sigmoid(x @ g_weight.T + g_bias)
    return jax.nn.sigmoid(en @ h_weight.T + h_bias)


if __name__ == "__main__":
    # Small shapes consistent with AutoEncoder(num, k=100)
    B, num, k = 16, 256, 100

    key = jax.random.PRNGKey(0)
    kx, kg_w, kg_b, kh_w, kh_b = jax.random.split(key, 5)

    # Deterministic parameter init mimicking nn.Linear: U(-1/sqrt(fan_in), ...)
    g_bound = 1.0 / jnp.sqrt(jnp.float32(num))
    h_bound = 1.0 / jnp.sqrt(jnp.float32(k))
    g_weight = jax.random.uniform(kg_w, (k, num), jnp.float32, -g_bound, g_bound)
    g_bias   = jax.random.uniform(kg_b, (k,),     jnp.float32, -g_bound, g_bound)
    h_weight = jax.random.uniform(kh_w, (num, k), jnp.float32, -h_bound, h_bound)
    h_bias   = jax.random.uniform(kh_b, (num,),   jnp.float32, -h_bound, h_bound)

    x_f32 = jax.random.uniform(kx, (B, num), jnp.float32)  # user vectors in [0, 1)
    x = x_f32.astype(jnp.bfloat16)  # bf16 across the kernel boundary (I/O bytes halved)

    # One-time layout prep (pre-transpose, pad k & num -> 128, cast to bf16).
    w1, b1, w2, b2 = prepare_params(g_weight, g_bias, h_weight, h_bias)

    out = autoencoder_forward(x, w1, b1, w2, b2)
    out = jax.block_until_ready(out)

    # Reference uses the same bf16-rounded inputs so only matmul/act precision differs.
    ref = reference_forward(x.astype(jnp.float32), g_weight, g_bias, h_weight, h_bias)
    assert out.shape == (B, num)
    assert jnp.allclose(out.astype(jnp.float32), ref, atol=2e-2, rtol=2e-2), \
        "mismatch vs reference"

    print("KERNEL_OK")
</pallas_src>

<mosaic_0001>
module attributes {stable_mosaic.version = 11 : i64} {
  func.func @autoencoder_kernel(%arg0: i32, %arg1: memref<16x256xbf16, #tpu.memory_space<vmem>>, %arg2: memref<256x128xbf16, #tpu.memory_space<vmem>>, %arg3: memref<1x128xf32, #tpu.memory_space<vmem>>, %arg4: memref<128x256xbf16, #tpu.memory_space<vmem>>, %arg5: memref<1x256xf32, #tpu.memory_space<vmem>>, %arg6: memref<16x256xbf16, #tpu.memory_space<vmem>>) attributes {dimension_semantics = [#tpu.dimension_semantics<parallel>], iteration_bounds = array<i64: 1>, scalar_prefetch = 0 : i64, scratch_operands = 0 : i64, tpu.core_type = #tpu.core_type<tc>, window_params = [{transform_indices = @transform_0, window_bounds = array<i64: 16, 256>}, {pipeline_mode = #tpu.pipeline_mode<synchronous>, transform_indices = @transform_1, window_bounds = array<i64: 256, 128>}, {pipeline_mode = #tpu.pipeline_mode<synchronous>, transform_indices = @transform_2, window_bounds = array<i64: 1, 128>}, {pipeline_mode = #tpu.pipeline_mode<synchronous>, transform_indices = @transform_3, window_bounds = array<i64: 128, 256>}, {pipeline_mode = #tpu.pipeline_mode<synchronous>, transform_indices = @transform_4, window_bounds = array<i64: 1, 256>}, {transform_indices = @transform_5, window_bounds = array<i64: 16, 256>}]} {
    %c0 = arith.constant 0 : index
    %c0_0 = arith.constant 0 : index
    %0 = vector.load %arg1[%c0, %c0_0] : memref<16x256xbf16, #tpu.memory_space<vmem>>, vector<16x256xbf16>
    %c0_1 = arith.constant 0 : index
    %c0_2 = arith.constant 0 : index
    %1 = vector.load %arg2[%c0_1, %c0_2] : memref<256x128xbf16, #tpu.memory_space<vmem>>, vector<256x128xbf16>
    %cst = arith.constant dense<0.000000e+00> : vector<16x128xf32>
    %2 = tpu.matmul %0, %1, %cst {dimension_numbers = #tpu.dot_dimension_numbers<[1], [0], [0], [1], [0, 0, 1, 1], [], []>} : vector<16x256xbf16>, vector<256x128xbf16>, vector<16x128xf32> -> vector<16x128xf32>
    %c0_3 = arith.constant 0 : index
    %c0_4 = arith.constant 0 : index
    %3 = vector.load %arg3[%c0_3, %c0_4] : memref<1x128xf32, #tpu.memory_space<vmem>>, vector<1x128xf32>
    %4 = vector.broadcast %3 : vector<1x128xf32> to vector<16x128xf32>
    %5 = arith.addf %2, %4 : vector<16x128xf32>
    %6 = arith.negf %5 : vector<16x128xf32>
    %7 = math.exp %6 : vector<16x128xf32>
    %cst_5 = arith.constant 1.000000e+00 : f32
    %8 = vector.broadcast %cst_5 : f32 to vector<16x128xf32>
    %9 = arith.addf %8, %7 : vector<16x128xf32>
    %10 = arith.divf %8, %9 : vector<16x128xf32>
    %11 = arith.truncf %10 : vector<16x128xf32> to vector<16x128xbf16>
    %c0_6 = arith.constant 0 : index
    %c0_7 = arith.constant 0 : index
    %12 = vector.load %arg4[%c0_6, %c0_7] : memref<128x256xbf16, #tpu.memory_space<vmem>>, vector<128x256xbf16>
    %cst_8 = arith.constant dense<0.000000e+00> : vector<16x256xf32>
    %13 = tpu.matmul %11, %12, %cst_8 {dimension_numbers = #tpu.dot_dimension_numbers<[1], [0], [0], [1], [0, 0, 1, 1], [], []>} : vector<16x128xbf16>, vector<128x256xbf16>, vector<16x256xf32> -> vector<16x256xf32>
    %c0_9 = arith.constant 0 : index
    %c0_10 = arith.constant 0 : index
    %14 = vector.load %arg5[%c0_9, %c0_10] : memref<1x256xf32, #tpu.memory_space<vmem>>, vector<1x256xf32>
    %15 = vector.broadcast %14 : vector<1x256xf32> to vector<16x256xf32>
    %16 = arith.addf %13, %15 : vector<16x256xf32>
    %17 = arith.negf %16 : vector<16x256xf32>
    %18 = math.exp %17 : vector<16x256xf32>
    %cst_11 = arith.constant 1.000000e+00 : f32
    %19 = vector.broadcast %cst_11 : f32 to vector<16x256xf32>
    %20 = arith.addf %19, %18 : vector<16x256xf32>
    %21 = arith.divf %19, %20 : vector<16x256xf32>
    %22 = arith.truncf %21 : vector<16x256xf32> to vector<16x256xbf16>
    %c0_12 = arith.constant 0 : index
    %c0_13 = arith.constant 0 : index
    %23 = vector.load %arg6[%c0_12, %c0_13] : memref<16x256xbf16, #tpu.memory_space<vmem>>, vector<16x256xbf16>
    tpu.vector_store %arg6[%c0_12, %c0_13], %22 {strides = array<i32>} : memref<16x256xbf16, #tpu.memory_space<vmem>>, vector<16x256xbf16>,
    return
  }
  func.func @transform_0(%arg0: i32) -> (i32, i32) {
    %c0_i32 = arith.constant 0 : i32
    %c0_i32_0 = arith.constant 0 : i32
    return %arg0, %c0_i32 : i32, i32
  }
  func.func @transform_1(%arg0: i32) -> (i32, i32) {
    %c0_i32 = arith.constant 0 : i32
    %c0_i32_0 = arith.constant 0 : i32
    %c0_i32_1 = arith.constant 0 : i32
    return %c0_i32, %c0_i32_0 : i32, i32
  }
  func.func @transform_2(%arg0: i32) -> (i32, i32) {
    %c0_i32 = arith.constant 0 : i32
    %c0_i32_0 = arith.constant 0 : i32
    %c0_i32_1 = arith.constant 0 : i32
    return %c0_i32, %c0_i32_0 : i32, i32
  }
  func.func @transform_3(%arg0: i32) -> (i32, i32) {
    %c0_i32 = arith.constant 0 : i32
    %c0_i32_0 = arith.constant 0 : i32
    %c0_i32_1 = arith.constant 0 : i32
    return %c0_i32, %c0_i32_0 : i32, i32
  }
  func.func @transform_4(%arg0: i32) -> (i32, i32) {
    %c0_i32 = arith.constant 0 : i32
    %c0_i32_0 = arith.constant 0 : i32
    %c0_i32_1 = arith.constant 0 : i32
    return %c0_i32, %c0_i32_0 : i32, i32
  }
  func.func @transform_5(%arg0: i32) -> (i32, i32) {
    %c0_i32 = arith.constant 0 : i32
    %c0_i32_0 = arith.constant 0 : i32
    return %arg0, %c0_i32 : i32, i32
  }
}

module attributes {stable_mosaic.version = 11 : i64} {
  func.func @autoencoder_kernel(%arg0: i32, %arg1: memref<16x256xbf16, #tpu.memory_space<vmem>>, %arg2: memref<256x128xbf16, #tpu.memory_space<vmem>>, %arg3: memref<1x128xf32, #tpu.memory_space<vmem>>, %arg4: memref<128x256xbf16, #tpu.memory_space<vmem>>, %arg5: memref<1x256xf32, #tpu.memory_space<vmem>>, %arg6: memref<16x256xbf16, #tpu.memory_space<vmem>>) attributes {dimension_semantics = [#tpu.dimension_semantics<parallel>], iteration_bounds = array<i64: 1>, scalar_prefetch = 0 : i64, scratch_operands = 0 : i64, tpu.core_type = #tpu.core_type<tc>, window_params = [{transform_indices = @transform_0, window_bounds = array<i64: 16, 256>}, {pipeline_mode = #tpu.pipeline_mode<synchronous>, transform_indices = @transform_1, window_bounds = array<i64: 256, 128>}, {pipeline_mode = #tpu.pipeline_mode<synchronous>, transform_indices = @transform_2, window_bounds = array<i64: 1, 128>}, {pipeline_mode = #tpu.pipeline_mode<synchronous>, transform_indices = @transform_3, window_bounds = array<i64: 128, 256>}, {pipeline_mode = #tpu.pipeline_mode<synchronous>, transform_indices = @transform_4, window_bounds = array<i64: 1, 256>}, {transform_indices = @transform_5, window_bounds = array<i64: 16, 256>}]} {
    %c0 = arith.constant 0 : index
    %c0_0 = arith.constant 0 : index
    %0 = vector.load %arg1[%c0, %c0_0] : memref<16x256xbf16, #tpu.memory_space<vmem>>, vector<16x256xbf16>
    %c0_1 = arith.constant 0 : index
    %c0_2 = arith.constant 0 : index
    %1 = vector.load %arg2[%c0_1, %c0_2] : memref<256x128xbf16, #tpu.memory_space<vmem>>, vector<256x128xbf16>
    %cst = arith.constant dense<0.000000e+00> : vector<16x128xf32>
    %2 = tpu.matmul %0, %1, %cst {dimension_numbers = #tpu.dot_dimension_numbers<[1], [0], [0], [1], [0, 0, 1, 1], [], []>} : vector<16x256xbf16>, vector<256x128xbf16>, vector<16x128xf32> -> vector<16x128xf32>
    %c0_3 = arith.constant 0 : index
    %c0_4 = arith.constant 0 : index
    %3 = vector.load %arg3[%c0_3, %c0_4] : memref<1x128xf32, #tpu.memory_space<vmem>>, vector<1x128xf32>
    %4 = vector.broadcast %3 : vector<1x128xf32> to vector<16x128xf32>
    %5 = arith.addf %2, %4 : vector<16x128xf32>
    %6 = arith.negf %5 : vector<16x128xf32>
    %7 = math.exp %6 : vector<16x128xf32>
    %cst_5 = arith.constant 1.000000e+00 : f32
    %8 = vector.broadcast %cst_5 : f32 to vector<16x128xf32>
    %9 = arith.addf %8, %7 : vector<16x128xf32>
    %10 = arith.divf %8, %9 : vector<16x128xf32>
    %11 = arith.truncf %10 : vector<16x128xf32> to vector<16x128xbf16>
    %c0_6 = arith.constant 0 : index
    %c0_7 = arith.constant 0 : index
    %12 = vector.load %arg4[%c0_6, %c0_7] : memref<128x256xbf16, #tpu.memory_space<vmem>>, vector<128x256xbf16>
    %cst_8 = arith.constant dense<0.000000e+00> : vector<16x256xf32>
    %13 = tpu.matmul %11, %12, %cst_8 {dimension_numbers = #tpu.dot_dimension_numbers<[1], [0], [0], [1], [0, 0, 1, 1], [], []>} : vector<16x128xbf16>, vector<128x256xbf16>, vector<16x256xf32> -> vector<16x256xf32>
    %c0_9 = arith.constant 0 : index
    %c0_10 = arith.constant 0 : index
    %14 = vector.load %arg5[%c0_9, %c0_10] : memref<1x256xf32, #tpu.memory_space<vmem>>, vector<1x256xf32>
    %15 = vector.broadcast %14 : vector<1x256xf32> to vector<16x256xf32>
    %16 = arith.addf %13, %15 : vector<16x256xf32>
    %17 = arith.negf %16 : vector<16x256xf32>
    %18 = math.exp %17 : vector<16x256xf32>
    %cst_11 = arith.constant 1.000000e+00 : f32
    %19 = vector.broadcast %cst_11 : f32 to vector<16x256xf32>
    %20 = arith.addf %19, %18 : vector<16x256xf32>
    %21 = arith.divf %19, %20 : vector<16x256xf32>
    %22 = arith.truncf %21 : vector<16x256xf32> to vector<16x256xbf16>
    %c0_12 = arith.constant 0 : index
    %c0_13 = arith.constant 0 : index
    %23 = vector.load %arg6[%c0_12, %c0_13] : memref<16x256xbf16, #tpu.memory_space<vmem>>, vector<16x256xbf16>
    tpu.vector_store %arg6[%c0_12, %c0_13], %22 {strides = array<i32>} : memref<16x256xbf16, #tpu.memory_space<vmem>>, vector<16x256xbf16>,
    return
  }
  func.func @transform_0(%arg0: i32) -> (i32, i32) {
    %c0_i32 = arith.constant 0 : i32
    %c0_i32_0 = arith.constant 0 : i32
    return %arg0, %c0_i32 : i32, i32
  }
  func.func @transform_1(%arg0: i32) -> (i32, i32) {
    %c0_i32 = arith.constant 0 : i32
    %c0_i32_0 = arith.constant 0 : i32
    %c0_i32_1 = arith.constant 0 : i32
    return %c0_i32, %c0_i32_0 : i32, i32
  }
  func.func @transform_2(%arg0: i32) -> (i32, i32) {
    %c0_i32 = arith.constant 0 : i32
    %c0_i32_0 = arith.constant 0 : i32
    %c0_i32_1 = arith.constant 0 : i32
    return %c0_i32, %c0_i32_0 : i32, i32
  }
  func.func @transform_3(%arg0: i32) -> (i32, i32) {
    %c0_i32 = arith.constant 0 : i32
    %c0_i32_0 = arith.constant 0 : i32
    %c0_i32_1 = arith.constant 0 : i32
    return %c0_i32, %c0_i32_0 : i32, i32
  }
  func.func @transform_4(%arg0: i32) -> (i32, i32) {
    %c0_i32 = arith.constant 0 : i32
    %c0_i32_0 = arith.constant 0 : i32
    %c0_i32_1 = arith.constant 0 : i32
    return %c0_i32, %c0_i32_0 : i32, i32
  }
  func.func @transform_5(%arg0: i32) -> (i32, i32) {
    %c0_i32 = arith.constant 0 : i32
    %c0_i32_0 = arith.constant 0 : i32
    return %arg0, %c0_i32 : i32, i32
  }
}

</mosaic_0001>

<bundles_post_ra>
// kernel: tpu_custom_call.1
= control target key start
LH: loop header
LB: loop body
LE: loop exit
PB: predicated region body
PF: predicated region fallthrough
CT: control target
= control target key end

     0   :  { %10 = vsyncpa [#allocation3], 0  ;;  %s885_s0 = inlined_call_operand.hbm [shape: bf16[16,256], index: 0, kind: input, shape index: {}]   ;;  %s886_s1 = inlined_call_operand.hbm [shape: bf16[256,128], index: 1, kind: input, shape index: {}]   ;;  %s887_s2 = inlined_call_operand.vmem [shape: f32[1,128], index: 2, kind: input, shape index: {}]   ;;  %s888_s3 = inlined_call_operand.hbm [shape: bf16[128,256], index: 3, kind: input, shape index: {}]   ;;  %s889_s4 = inlined_call_operand.vmem [shape: f32[1,256], index: 4, kind: input, shape index: {}]   ;;  %s890_s5 = inlined_call_operand.hbm [shape: bf16[16,256], index: 5, kind: output, shape index: {}]  }
   0x1   :  { %11 = vsyncpa [#allocation6], 0  ;;  %s30_s20 = sshll.u32 %s886_s1, 4  ;;  %s31_s20 = int_to_ptr.hbm [resolvable:$true] %s30_s20 }
   0x2   :  { %12 = vsyncpa [#allocation4], 0  ;;  %s820_s21 = smov [#allocation5]   ;;  %s17_s25 = sshll.u32 %s885_s0, 4  ;;  %s18_s25 = int_to_ptr.hbm [resolvable:$true] %s17_s25 }
   0x3   :  { %s32_s22 = sshll.u32 %s820_s21, 4  ;;  %s821_s26 = smov 64   ;;  %s33_s22 = int_to_ptr.vmem [resolvable:$true] %s32_s22 }
   0x4   :  { %s822_s27 = smov 4   ;;  %s823_s28 = smov [#allocation2]  }
   0x5   :  { %38 = dma.hbm_to_vmem [thread:$0]  %s31_s20, 2048, %s33_s22, [#allocation6], %s821_s26, %s821_s26, %s822_s27  }
   0x6   :  { %s19_s29 = sshll.u32 %s823_s28, 4  ;;  %s824_s30 = smov 128   ;;  %s20_s29 = int_to_ptr.vmem [resolvable:$true] %s19_s29 }
   0x7   :  { %s825_s6 = smov 8   ;;  %s45_s8 = sshll.u32 %s888_s3, 4  ;;  %s46_s8 = int_to_ptr.hbm [resolvable:$true] %s45_s8 }
   0x8   :  { %25 = dma.hbm_to_vmem [thread:$0]  %s18_s25, 256, %s20_s29, [#allocation3], %s824_s30, %s824_s30, %s825_s6  }
   0x9   :  { %s826_s9 = smov [#allocation7]  }
   0xa   :  { %s47_s0 = sshll.u32 %s826_s9, 4  ;;  %s48_s0 = int_to_ptr.vmem [resolvable:$true] %s47_s0 }
   0xb   :  { %53 = dma.hbm_to_vmem [thread:$0]  %s46_s8, 2048, %s48_s0, [#allocation6], %s824_s30, %s824_s30, %s825_s6  }
   0xc   :  { %814 = dma.done.wait [#allocation3], 256  }
   0xd   :  { %815 = vsyncadd [#allocation3], 4294967040 }
   0xe   :  { %816 = dma.done.wait [#allocation6], 4096  }
   0xf   :  { %817 = vsyncadd [#allocation6], 4294963200  ;;  %v660_v0 = vld [vmem:[#allocation5 + $0x38] sm:$0xff]  ;;  %v659_v2 = vld [vmem:[#allocation5 + $0x30] sm:$0xff]  ;;  %s495_s15 = sshll.u32 %s890_s5, 4  ;;  %s496_s15 = int_to_ptr.hbm [resolvable:$true] %s495_s15 }
  0x10   :  { %v668_v1 = vld [vmem:[#allocation5 + $0x78] sm:$0xff]  ;;  %212 = vmatpush.bf16.msra.mxu0 %v660_v0  ;;  %v667_v3 = vld [vmem:[#allocation5 + $0x70] sm:$0xff]  ;;  %v658_v4 = vld [vmem:[#allocation5 + $0x28] sm:$0xff] }
  0x11   :  { %226 = vmatpush.bf16.msra.mxu1 %v668_v1  ;;  %v666_v5 = vld [vmem:[#allocation5 + $0x68] sm:$0xff]  ;;  %v657_v6 = vld [vmem:[#allocation5 + $0x20] sm:$0xff]  ;;  %v656_v8 = vld [vmem:[#allocation5 + $0x18] sm:$0xff] }
  0x12   :  { %v665_v7 = vld [vmem:[#allocation5 + $0x60] sm:$0xff]  ;;  %v664_v9 = vld [vmem:[#allocation5 + $0x58] sm:$0xff]  ;;  %v655_v10 = vld [vmem:[#allocation5 + $0x10] sm:$0xff] }
  0x13   :  { %v663_v11 = vld [vmem:[#allocation5 + $0x50] sm:$0xff]  ;;  %v654_v12 = vld [vmem:[#allocation5 + $0x8] sm:$0xff]  ;;  %v653_v14 = vld [vmem:[#allocation5] sm:$0xff] }
  0x14   :  { %213 = vmatpush.bf16.msra.mxu0 %v659_v2  ;;  %v662_v13 = vld [vmem:[#allocation5 + $0x48] sm:$0xff]  ;;  %v661_v15 = vld [vmem:[#allocation5 + $0x40] sm:$0xff]  ;;  %v511_v16 = vld [vmem:[#allocation2] sm:$0xf] }
  0x15   :  { %227 = vmatpush.bf16.msra.mxu1 %v667_v3  ;;  %v652_v17 = vld [vmem:[#allocation2 + $0x4] sm:$0xf0]  ;;  %v651_v18 = vld [vmem:[#allocation2 + $0x4] sm:$0xf]  ;;  %v513_v19 = vld [vmem:[#allocation2 + $0x8] sm:$0xf0] }
  0x16   :  { %v512_v20 = vor.u32 %v652_v17, %v511_v16  ;;  %v516_v21 = vor.u32 %v651_v18, %v513_v19  ;;  %v641_v22 = vld [vmem:[#allocation7 + $0x70] sm:$0xf]  ;;  %v684_v23 = vld [vmem:[#allocation7 + $0x74] sm:$0xf0]  ;;  %v683_v24 = vld [vmem:[#allocation7 + $0x74] sm:$0xf] }
  0x17   :  { %v642_v25 = vor.u32 %v684_v23, %v641_v22  ;;  %v643_v26 = vld [vmem:[#allocation7 + $0x78] sm:$0xf0]  ;;  %v633_v28 = vld [vmem:[#allocation7 + $0x60] sm:$0xf]  ;;  %v682_v29 = vld [vmem:[#allocation7 + $0x64] sm:$0xf0] }
  0x18   :  { %214 = vmatpush.bf16.msra.mxu0 %v658_v4  ;;  %v646_v27 = vor.u32 %v683_v24, %v643_v26  ;;  %v681_v30 = vld [vmem:[#allocation7 + $0x64] sm:$0xf]  ;;  %v634_v31 = vor.u32 %v682_v29, %v633_v28  ;;  %v635_v32 = vld [vmem:[#allocation7 + $0x68] sm:$0xf0]  ;;  %v625_v34 = vld [vmem:[#allocation7 + $0x50] sm:$0xf] }
  0x19   :  { %228 = vmatpush.bf16.msra.mxu1 %v666_v5  ;;  %381 = vmatpush.bf16.msra.mxu2 %v642_v25  ;;  %v638_v33 = vor.u32 %v681_v30, %v635_v32  ;;  %v680_v35 = vld [vmem:[#allocation7 + $0x54] sm:$0xf0]  ;;  %v679_v36 = vld [vmem:[#allocation7 + $0x54] sm:$0xf]  ;;  %v627_v38 = vld [vmem:[#allocation7 + $0x58] sm:$0xf0] }
  0x1a   :  { %395 = vmatpush.bf16.msra.mxu3 %v646_v27  ;;  %v626_v37 = vor.u32 %v680_v35, %v625_v34  ;;  %v630_v39 = vor.u32 %v679_v36, %v627_v38  ;;  %v617_v40 = vld [vmem:[#allocation7 + $0x40] sm:$0xf]  ;;  %v678_v41 = vld [vmem:[#allocation7 + $0x44] sm:$0xf0]  ;;  %v677_v42 = vld [vmem:[#allocation7 + $0x44] sm:$0xf] }
  0x1b   :  { %v618_v43 = vor.u32 %v678_v41, %v617_v40  ;;  %v619_v44 = vld [vmem:[#allocation7 + $0x48] sm:$0xf0]  ;;  %v609_v46 = vld [vmem:[#allocation7 + $0x30] sm:$0xf]  ;;  %v676_v47 = vld [vmem:[#allocation7 + $0x34] sm:$0xf0] }
  0x1c   :  { %215 = vmatpush.bf16.msra.mxu0 %v657_v6  ;;  %v622_v45 = vor.u32 %v677_v42, %v619_v44  ;;  %v675_v48 = vld [vmem:[#allocation7 + $0x34] sm:$0xf]  ;;  %v610_v49 = vor.u32 %v676_v47, %v609_v46  ;;  %v611_v50 = vld [vmem:[#allocation7 + $0x38] sm:$0xf0]  ;;  %v601_v51 = vld [vmem:[#allocation7 + $0x20] sm:$0xf] }
  0x1d   :  { %229 = vmatpush.bf16.msra.mxu1 %v665_v7  ;;  %382 = vmatpush.bf16.msra.mxu2 %v634_v31  ;;  %v674_v52 = vld [vmem:[#allocation7 + $0x24] sm:$0xf0]  ;;  %v614_v53 = vor.u32 %v675_v48, %v611_v50  ;;  %v673_v54 = vld [vmem:[#allocation7 + $0x24] sm:$0xf]  ;;  %v603_v55 = vld [vmem:[#allocation7 + $0x28] sm:$0xf0] }
  0x1e   :  { %396 = vmatpush.bf16.msra.mxu3 %v638_v33  ;;  %v602_v56 = vor.u32 %v674_v52, %v601_v51  ;;  %v693_v57 = vld [vmem:[%s887_s2] ss:$0 sm:$0xff]  ;;  %v606_v58 = vor.u32 %v673_v54, %v603_v55  ;;  %v672_v60 = vld [vmem:[#allocation7 + $0x14] sm:$0xf0]  ;;  %v671_v61 = vld [vmem:[#allocation7 + $0x14] sm:$0xf] }
  0x1f   :  { %v593_v59 = vld [vmem:[#allocation7 + $0x10] sm:$0xf]  ;;  %v595_v62 = vld [vmem:[#allocation7 + $0x18] sm:$0xf0]  ;;  %v585_v4 = vld [vmem:[#allocation7] sm:$0xf] }
  0x20   :  { %216 = vmatpush.bf16.msra.mxu0 %v656_v8  ;;  %v594_v1 = vor.u32 %v672_v60, %v593_v59  ;;  %v598_v3 = vor.u32 %v671_v61, %v595_v62  ;;  %v670_v5 = vld [vmem:[#allocation7 + $0x4] sm:$0xf0]  ;;  %v669_v6 = vld [vmem:[#allocation7 + $0x4] sm:$0xf]  ;;  %v587_v7 = vld [vmem:[#allocation7 + $0x8] sm:$0xf0] }
  0x21   :  { %230 = vmatpush.bf16.msra.mxu1 %v664_v9  ;;  %383 = vmatpush.bf16.msra.mxu2 %v626_v37  ;;  %v586_v9 = vor.u32 %v670_v5, %v585_v4  ;;  %v295_v42 = vld [vmem:[%s889_s4] sm:$0x3]  ;;  %s827_s4 = smov [#allocation8]  }
  0x22   :  { %397 = vmatpush.bf16.msra.mxu3 %v630_v39  ;;  %v298_v44 = vperm.slane %v295_v42, 1  ;;  %s493_s12 = sshll.u32 %s827_s4, 4  ;;  %s494_s12 = int_to_ptr.vmem [resolvable:$true] %s493_s12 }
  0x24   :  { %217 = vmatpush.bf16.msra.mxu0 %v655_v10 }
  0x25   :  { %231 = vmatpush.bf16.msra.mxu1 %v663_v11  ;;  %384 = vmatpush.bf16.msra.mxu2 %v618_v43  ;;  %v590_v11 = vor.u32 %v669_v6, %v587_v7  ;;  %v297_v43 = vperm.slane %v295_v42, 0 }
  0x26   :  { %398 = vmatpush.bf16.msra.mxu3 %v622_v45 }
  0x28   :  { %218 = vmatpush.bf16.msra.mxu0 %v654_v12 }
  0x29   :  { %232 = vmatpush.bf16.msra.mxu1 %v662_v13  ;;  %385 = vmatpush.bf16.msra.mxu2 %v610_v49 }
  0x2a   :  { %399 = vmatpush.bf16.msra.mxu3 %v614_v53 }
  0x2c   :  { %219 = vmatpush.bf16.msra.mxu0 %v653_v14 }
  0x2d   :  { %233 = vmatpush.bf16.msra.mxu1 %v661_v15  ;;  %386 = vmatpush.bf16.msra.mxu2 %v602_v56 }
  0x2e   :  { %400 = vmatpush.bf16.msra.mxu3 %v606_v58 }
  0x2f   :  { %220 = vmatmul.bf16.vlgmr.msra.gmra.mxu0 %v512_v20 }
  0x30   :  { %234 = vmatmul.bf16.vlgmr.msra.gmra.mxu1 %v516_v21 }
  0x31   :  { %387 = vmatpush.bf16.msra.mxu2 %v594_v1 }
  0x32   :  { %401 = vmatpush.bf16.msra.mxu3 %v598_v3 }
  0x35   :  { %388 = vmatpush.bf16.msra.mxu2 %v586_v9 }
  0x36   :  { %402 = vmatpush.bf16.msra.mxu3 %v590_v11 }
  0xac   :  { %v221_v63 = vpop.f32.mrf.mxu0 }
  0xad   :  { %v235_v0 = vpop.f32.mrf.mxu1  ;;  %v222_v2 = vadd.f32 %v693_v57, %v221_v63 }
  0xaf   :  { %v236_v8 = vadd.f32 %v235_v0, %v222_v2 }
  0xb1   :  { %v581_v10 = vmul.f32 -1.442695, %v236_v8 }
  0xb3   :  { %694 = vpow2.f32 %v581_v10 }
  0xb4   :  { %v223_v12 = vpop.f32.mrf.mxu0 }
  0xb5   :  { %v224_v13 = vadd.f32 %v693_v57, %v223_v12  ;;  %v237_v14 = vpop.f32.mrf.mxu1 }
  0xb7   :  { %v238_v15 = vadd.f32 %v237_v14, %v224_v13 }
  0xb9   :  { %v695_v16 = vpop.eup %694  ;;  %v582_v17 = vmul.f32 -1.442695, %v238_v15 }
  0xba   :  { %v246_v18 = vadd.f32 1.0, %v695_v16 }
  0xbb   :  { %696 = vpow2.f32 %v582_v17 }
  0xbc   :  { %698 = vrcp.f32 %v246_v18  ;;  %vm253_vm1 = vweird.f32 %v246_v18  ;;  %v259_v29 = vand.u32 2147483648, %v246_v18  ;;  %v257_v31 = vand.u32 2147483647, %v246_v18 }
  0xbe   :  { %v260_v36 = vor.u32 1.1754944e-38, %v259_v29  ;;  %vm258_vm6 = vcmp.eq.f32.partialorder %v257_v31, 8.507059e+37 }
  0xc1   :  { %v697_v19 = vpop.eup %696 }
  0xc2   :  { %v699_v20 = vpop.eup %698  ;;  %v247_v21 = vadd.f32 1.0, %v697_v19 }
  0xc3   :  { %v249_v22 = vmul.f32 %v699_v20, %v246_v18  ;;  %vm254_vm0 = vweird.f32 %v699_v20 }
  0xc4   :  { %700 = vrcp.f32 %v247_v21  ;;  %v274_v30 = vand.u32 2147483648, %v247_v21  ;;  %v272_v33 = vand.u32 2147483647, %v247_v21  ;;  %vm255_vm3 = vmor %vm253_vm1, %vm254_vm0  ;;  %vm268_vm4 = vweird.f32 %v247_v21 }
  0xc5   :  { %v250_v23 = vsub.f32 1.0, %v249_v22 }
  0xc6   :  { %v275_v37 = vor.u32 1.1754944e-38, %v274_v30  ;;  %vm273_vm7 = vcmp.eq.f32.partialorder %v272_v33, 8.507059e+37 }
  0xc7   :  { %v251_v24 = vmul.f32 %v699_v20, %v250_v23 }
  0xc9   :  { %v252_v27 = vadd.f32 %v699_v20, %v251_v24 }
  0xca   :  { %v701_v25 = vpop.eup %700 }
  0xcb   :  { %v264_v26 = vmul.f32 %v701_v25, %v247_v21  ;;  %vm269_vm2 = vweird.f32 %v701_v25  ;;  %v256_v34 = vsel %vm255_vm3, %v699_v20, %v252_v27 }
  0xcc   :  { %vm270_vm5 = vmor %vm268_vm4, %vm269_vm2  ;;  %v261_v39 = vsel %vm258_vm6, %v260_v36, %v256_v34 }
  0xcd   :  { %v265_v28 = vsub.f32 1.0, %v264_v26 }
  0xcf   :  { %v266_v32 = vmul.f32 %v701_v25, %v265_v28 }
  0xd1   :  { %v267_v35 = vadd.f32 %v701_v25, %v266_v32 }
  0xd3   :  { %v271_v38 = vsel %vm270_vm5, %v701_v25, %v267_v35 }
  0xd4   :  { %v276_v40 = vsel %vm273_vm7, %v275_v37, %v271_v38 }
  0xd5   :  { %v278_v41 = vpack.c.bf16 %v276_v40, %v261_v39 }
  0xd7   :  { %389 = vmatmul.bf16.vlgmr.msra.gmra.mxu2 %v278_v41  ;;  %403 = vmatmul.bf16.vlgmr.msra.gmra.mxu3 %v278_v41 }
 0x15a   :  { %v390_v45 = vpop.f32.mrf.mxu2  ;;  %v404_v46 = vpop.f32.mrf.mxu3 }
 0x15b   :  { %v391_v47 = vadd.f32 %v390_v45, %v297_v43  ;;  %v405_v48 = vadd.f32 %v404_v46, %v298_v44 }
 0x15d   :  { %v647_v49 = vmul.f32 -1.442695, %v391_v47  ;;  %v648_v50 = vmul.f32 -1.442695, %v405_v48 }
 0x15f   :  { %702 = vpow2.f32 %v647_v49 }
 0x160   :  { %704 = vpow2.f32 %v648_v50 }
 0x162   :  { %v392_v51 = vpop.f32.mrf.mxu2  ;;  %v406_v52 = vpop.f32.mrf.mxu3 }
 0x163   :  { %v393_v53 = vadd.f32 %v392_v51, %v297_v43  ;;  %v407_v54 = vadd.f32 %v406_v52, %v298_v44 }
 0x165   :  { %v703_v55 = vpop.eup %702  ;;  %v649_v56 = vmul.f32 -1.442695, %v393_v53  ;;  %v650_v59 = vmul.f32 -1.442695, %v407_v54 }
 0x166   :  { %v705_v57 = vpop.eup %704  ;;  %v421_v58 = vadd.f32 1.0, %v703_v55 }
 0x167   :  { %v422_v60 = vadd.f32 1.0, %v705_v57  ;;  %706 = vpow2.f32 %v649_v56 }
 0x168   :  { %708 = vrcp.f32 %v421_v58  ;;  %v434_v7 = vand.u32 2147483647, %v421_v58  ;;  %v436_v8 = vand.u32 2147483648, %v421_v58  ;;  %vm430_vm10 = vweird.f32 %v421_v58 }
 0x169   :  { %710 = vrcp.f32 %v422_v60  ;;  %v451_v10 = vand.u32 2147483648, %v422_v60  ;;  %v449_v12 = vand.u32 2147483647, %v422_v60  ;;  %vm445_vm12 = vweird.f32 %v422_v60 }
 0x16a   :  { %712 = vpow2.f32 %v650_v59  ;;  %v437_v15 = vor.u32 1.1754944e-38, %v436_v8  ;;  %vm435_vm13 = vcmp.eq.f32.partialorder %v434_v7, 8.507059e+37 }
 0x16b   :  { %v452_v19 = vor.u32 1.1754944e-38, %v451_v10  ;;  %vm450_vm15 = vcmp.eq.f32.partialorder %v449_v12, 8.507059e+37 }
 0x16d   :  { %v707_v61 = vpop.eup %706 }
 0x16e   :  { %v709_v62 = vpop.eup %708  ;;  %v423_v63 = vadd.f32 1.0, %v707_v61 }
 0x16f   :  { %v711_v0 = vpop.eup %710  ;;  %v426_v1 = vmul.f32 %v709_v62, %v421_v58  ;;  %vm431_vm8 = vweird.f32 %v709_v62 }
 0x170   :  { %v713_v2 = vpop.eup %712  ;;  %v441_v3 = vmul.f32 %v711_v0, %v422_v60  ;;  %714 = vrcp.f32 %v423_v63  ;;  %vm446_vm9 = vweird.f32 %v711_v0  ;;  %vm432_vm11 = vmor %vm430_vm10, %vm431_vm8  ;;  %v466_v28 = vand.u32 2147483648, %v423_v63 }
 0x171   :  { %v427_v4 = vsub.f32 1.0, %v426_v1  ;;  %v424_v5 = vadd.f32 1.0, %v713_v2  ;;  %vm447_vm14 = vmor %vm445_vm12, %vm446_vm9  ;;  %v464_v30 = vand.u32 2147483647, %v423_v63  ;;  %vm460_vm1 = vweird.f32 %v423_v63 }
 0x172   :  { %v442_v6 = vsub.f32 1.0, %v441_v3  ;;  %v467_v36 = vor.u32 1.1754944e-38, %v466_v28 }
 0x173   :  { %716 = vrcp.f32 %v424_v5  ;;  %v428_v9 = vmul.f32 %v709_v62, %v427_v4  ;;  %v481_v32 = vand.u32 2147483648, %v424_v5  ;;  %v479_v34 = vand.u32 2147483647, %v424_v5 }
 0x174   :  { %v443_v11 = vmul.f32 %v711_v0, %v442_v6  ;;  %vm465_vm4 = vcmp.eq.f32.partialorder %v464_v30, 8.507059e+37  ;;  %vm475_vm5 = vweird.f32 %v424_v5 }
 0x175   :  { %v429_v13 = vadd.f32 %v709_v62, %v428_v9  ;;  %v482_v39 = vor.u32 1.1754944e-38, %v481_v32  ;;  %vm480_vm7 = vcmp.eq.f32.partialorder %v479_v34, 8.507059e+37 }
 0x176   :  { %v715_v14 = vpop.eup %714  ;;  %v444_v16 = vadd.f32 %v711_v0, %v443_v11 }
 0x177   :  { %v456_v17 = vmul.f32 %v715_v14, %v423_v63  ;;  %v433_v18 = vsel %vm432_vm11, %v709_v62, %v429_v13  ;;  %vm461_vm0 = vweird.f32 %v715_v14 }
 0x178   :  { %v438_v20 = vsel %vm435_vm13, %v437_v15, %v433_v18  ;;  %v448_v21 = vsel %vm447_vm14, %v711_v0, %v444_v16  ;;  %vm462_vm2 = vmor %vm460_vm1, %vm461_vm0 }
 0x179   :  { %v717_v22 = vpop.eup %716  ;;  %v457_v23 = vsub.f32 1.0, %v456_v17  ;;  %v453_v24 = vsel %vm450_vm15, %v452_v19, %v448_v21 }
 0x17a   :  { %v471_v25 = vmul.f32 %v717_v22, %v424_v5  ;;  %v485_v26 = vpack.c.bf16 %v453_v24, %v438_v20  ;;  %vm476_vm3 = vweird.f32 %v717_v22 }
 0x17b   :  { %v458_v27 = vmul.f32 %v715_v14, %v457_v23  ;;  %vm477_vm6 = vmor %vm475_vm5, %vm476_vm3 }
 0x17c   :  { %v472_v29 = vsub.f32 1.0, %v471_v25  ;;  %487 = vst [vmem:[#allocation8] sm:$0xff] %v485_v26 }
 0x17d   :  { %v459_v31 = vadd.f32 %v715_v14, %v458_v27 }
 0x17e   :  { %v473_v33 = vmul.f32 %v717_v22, %v472_v29 }
 0x17f   :  { %v463_v35 = vsel %vm462_vm2, %v715_v14, %v459_v31 }
 0x180   :  { %v474_v37 = vadd.f32 %v717_v22, %v473_v33  ;;  %v468_v38 = vsel %vm465_vm4, %v467_v36, %v463_v35 }
 0x182   :  { %v478_v40 = vsel %vm477_vm6, %v717_v22, %v474_v37 }
 0x183   :  { %v483_v41 = vsel %vm480_vm7, %v482_v39, %v478_v40 }
 0x184   :  { %v486_v42 = vpack.c.bf16 %v483_v41, %v468_v38 }
 0x186   :  { %488 = vst [vmem:[#allocation8 + $0x8] sm:$0xff] %v486_v42 }
 0x187   :  { %501 = dma.vmem_to_hbm [thread:$0]  %s494_s12, 256, %s496_s15, [#allocation4], %s824_s30, %s824_s30, %s825_s6  }
 0x188   :  { %818 = dma.done.wait [#allocation4], 256  }
 0x189   :  { %819 = vsyncadd [#allocation4], 4294967040 }
 0x18a   :  { %506 = vsyncpa [#allocation3], 1 }
 0x18b   :  { %507 = vsyncpa [#allocation6], 1 }
 0x18c   :  { %508 = vsyncpa [#allocation4], 1 }

// kernel: tpu_custom_call.1
= control target key start
LH: loop header
LB: loop body
LE: loop exit
PB: predicated region body
PF: predicated region fallthrough
CT: control target
= control target key end

     0   :  { %10 = vsyncpa [#allocation3], 0  ;;  %s885_s0 = inlined_call_operand.hbm [shape: bf16[16,256], index: 0, kind: input, shape index: {}]   ;;  %s886_s1 = inlined_call_operand.hbm [shape: bf16[256,128], index: 1, kind: input, shape index: {}]   ;;  %s887_s2 = inlined_call_operand.vmem [shape: f32[1,128], index: 2, kind: input, shape index: {}]   ;;  %s888_s3 = inlined_call_operand.hbm [shape: bf16[128,256], index: 3, kind: input, shape index: {}]   ;;  %s889_s4 = inlined_call_operand.vmem [shape: f32[1,256], index: 4, kind: input, shape index: {}]   ;;  %s890_s5 = inlined_call_operand.hbm [shape: bf16[16,256], index: 5, kind: output, shape index: {}]  }
   0x1   :  { %11 = vsyncpa [#allocation6], 0  ;;  %s30_s20 = sshll.u32 %s886_s1, 4  ;;  %s31_s20 = int_to_ptr.hbm [resolvable:$true] %s30_s20 }
   0x2   :  { %12 = vsyncpa [#allocation4], 0  ;;  %s820_s21 = smov [#allocation5]   ;;  %s17_s25 = sshll.u32 %s885_s0, 4  ;;  %s18_s25 = int_to_ptr.hbm [resolvable:$true] %s17_s25 }
   0x3   :  { %s32_s22 = sshll.u32 %s820_s21, 4  ;;  %s821_s26 = smov 64   ;;  %s33_s22 = int_to_ptr.vmem [resolvable:$true] %s32_s22 }
   0x4   :  { %s822_s27 = smov 4   ;;  %s823_s28 = smov [#allocation2]  }
   0x5   :  { %38 = dma.hbm_to_vmem [thread:$0]  %s31_s20, 2048, %s33_s22, [#allocation6], %s821_s26, %s821_s26, %s822_s27  }
   0x6   :  { %s19_s29 = sshll.u32 %s823_s28, 4  ;;  %s824_s30 = smov 128   ;;  %s20_s29 = int_to_ptr.vmem [resolvable:$true] %s19_s29 }
   0x7   :  { %s825_s6 = smov 8   ;;  %s45_s8 = sshll.u32 %s888_s3, 4  ;;  %s46_s8 = int_to_ptr.hbm [resolvable:$true] %s45_s8 }
   0x8   :  { %25 = dma.hbm_to_vmem [thread:$0]  %s18_s25, 256, %s20_s29, [#allocation3], %s824_s30, %s824_s30, %s825_s6  }
   0x9   :  { %s826_s9 = smov [#allocation7]  }
   0xa   :  { %s47_s0 = sshll.u32 %s826_s9, 4  ;;  %s48_s0 = int_to_ptr.vmem [resolvable:$true] %s47_s0 }
   0xb   :  { %53 = dma.hbm_to_vmem [thread:$0]  %s46_s8, 2048, %s48_s0, [#allocation6], %s824_s30, %s824_s30, %s825_s6  }
   0xc   :  { %814 = dma.done.wait [#allocation3], 256  }
   0xd   :  { %815 = vsyncadd [#allocation3], 4294967040 }
   0xe   :  { %816 = dma.done.wait [#allocation6], 4096  }
   0xf   :  { %817 = vsyncadd [#allocation6], 4294963200  ;;  %v660_v0 = vld [vmem:[#allocation5 + $0x38] sm:$0xff]  ;;  %v659_v2 = vld [vmem:[#allocation5 + $0x30] sm:$0xff]  ;;  %s495_s15 = sshll.u32 %s890_s5, 4  ;;  %s496_s15 = int_to_ptr.hbm [resolvable:$true] %s495_s15 }
  0x10   :  { %v668_v1 = vld [vmem:[#allocation5 + $0x78] sm:$0xff]  ;;  %212 = vmatpush.bf16.msra.mxu0 %v660_v0  ;;  %v667_v3 = vld [vmem:[#allocation5 + $0x70] sm:$0xff]  ;;  %v658_v4 = vld [vmem:[#allocation5 + $0x28] sm:$0xff] }
  0x11   :  { %226 = vmatpush.bf16.msra.mxu1 %v668_v1  ;;  %v666_v5 = vld [vmem:[#allocation5 + $0x68] sm:$0xff]  ;;  %v657_v6 = vld [vmem:[#allocation5 + $0x20] sm:$0xff]  ;;  %v656_v8 = vld [vmem:[#allocation5 + $0x18] sm:$0xff] }
  0x12   :  { %v665_v7 = vld [vmem:[#allocation5 + $0x60] sm:$0xff]  ;;  %v664_v9 = vld [vmem:[#allocation5 + $0x58] sm:$0xff]  ;;  %v655_v10 = vld [vmem:[#allocation5 + $0x10] sm:$0xff] }
  0x13   :  { %v663_v11 = vld [vmem:[#allocation5 + $0x50] sm:$0xff]  ;;  %v654_v12 = vld [vmem:[#allocation5 + $0x8] sm:$0xff]  ;;  %v653_v14 = vld [vmem:[#allocation5] sm:$0xff] }
  0x14   :  { %213 = vmatpush.bf16.msra.mxu0 %v659_v2  ;;  %v662_v13 = vld [vmem:[#allocation5 + $0x48] sm:$0xff]  ;;  %v661_v15 = vld [vmem:[#allocation5 + $0x40] sm:$0xff]  ;;  %v511_v16 = vld [vmem:[#allocation2] sm:$0xf] }
  0x15   :  { %227 = vmatpush.bf16.msra.mxu1 %v667_v3  ;;  %v652_v17 = vld [vmem:[#allocation2 + $0x4] sm:$0xf0]  ;;  %v651_v18 = vld [vmem:[#allocation2 + $0x4] sm:$0xf]  ;;  %v513_v19 = vld [vmem:[#allocation2 + $0x8] sm:$0xf0] }
  0x16   :  { %v512_v20 = vor.u32 %v652_v17, %v511_v16  ;;  %v516_v21 = vor.u32 %v651_v18, %v513_v19  ;;  %v641_v22 = vld [vmem:[#allocation7 + $0x70] sm:$0xf]  ;;  %v684_v23 = vld [vmem:[#allocation7 + $0x74] sm:$0xf0]  ;;  %v683_v24 = vld [vmem:[#allocation7 + $0x74] sm:$0xf] }
  0x17   :  { %v642_v25 = vor.u32 %v684_v23, %v641_v22  ;;  %v643_v26 = vld [vmem:[#allocation7 + $0x78] sm:$0xf0]  ;;  %v633_v28 = vld [vmem:[#allocation7 + $0x60] sm:$0xf]  ;;  %v682_v29 = vld [vmem:[#allocation7 + $0x64] sm:$0xf0] }
  0x18   :  { %214 = vmatpush.bf16.msra.mxu0 %v658_v4  ;;  %v646_v27 = vor.u32 %v683_v24, %v643_v26  ;;  %v681_v30 = vld [vmem:[#allocation7 + $0x64] sm:$0xf]  ;;  %v634_v31 = vor.u32 %v682_v29, %v633_v28  ;;  %v635_v32 = vld [vmem:[#allocation7 + $0x68] sm:$0xf0]  ;;  %v625_v34 = vld [vmem:[#allocation7 + $0x50] sm:$0xf] }
  0x19   :  { %228 = vmatpush.bf16.msra.mxu1 %v666_v5  ;;  %381 = vmatpush.bf16.msra.mxu2 %v642_v25  ;;  %v638_v33 = vor.u32 %v681_v30, %v635_v32  ;;  %v680_v35 = vld [vmem:[#allocation7 + $0x54] sm:$0xf0]  ;;  %v679_v36 = vld [vmem:[#allocation7 + $0x54] sm:$0xf]  ;;  %v627_v38 = vld [vmem:[#allocation7 + $0x58] sm:$0xf0] }
  0x1a   :  { %395 = vmatpush.bf16.msra.mxu3 %v646_v27  ;;  %v626_v37 = vor.u32 %v680_v35, %v625_v34  ;;  %v630_v39 = vor.u32 %v679_v36, %v627_v38  ;;  %v617_v40 = vld [vmem:[#allocation7 + $0x40] sm:$0xf]  ;;  %v678_v41 = vld [vmem:[#allocation7 + $0x44] sm:$0xf0]  ;;  %v677_v42 = vld [vmem:[#allocation7 + $0x44] sm:$0xf] }
  0x1b   :  { %v618_v43 = vor.u32 %v678_v41, %v617_v40  ;;  %v619_v44 = vld [vmem:[#allocation7 + $0x48] sm:$0xf0]  ;;  %v609_v46 = vld [vmem:[#allocation7 + $0x30] sm:$0xf]  ;;  %v676_v47 = vld [vmem:[#allocation7 + $0x34] sm:$0xf0] }
  0x1c   :  { %215 = vmatpush.bf16.msra.mxu0 %v657_v6  ;;  %v622_v45 = vor.u32 %v677_v42, %v619_v44  ;;  %v675_v48 = vld [vmem:[#allocation7 + $0x34] sm:$0xf]  ;;  %v610_v49 = vor.u32 %v676_v47, %v609_v46  ;;  %v611_v50 = vld [vmem:[#allocation7 + $0x38] sm:$0xf0]  ;;  %v601_v51 = vld [vmem:[#allocation7 + $0x20] sm:$0xf] }
  0x1d   :  { %229 = vmatpush.bf16.msra.mxu1 %v665_v7  ;;  %382 = vmatpush.bf16.msra.mxu2 %v634_v31  ;;  %v674_v52 = vld [vmem:[#allocation7 + $0x24] sm:$0xf0]  ;;  %v614_v53 = vor.u32 %v675_v48, %v611_v50  ;;  %v673_v54 = vld [vmem:[#allocation7 + $0x24] sm:$0xf]  ;;  %v603_v55 = vld [vmem:[#allocation7 + $0x28] sm:$0xf0] }
  0x1e   :  { %396 = vmatpush.bf16.msra.mxu3 %v638_v33  ;;  %v602_v56 = vor.u32 %v674_v52, %v601_v51  ;;  %v693_v57 = vld [vmem:[%s887_s2] ss:$0 sm:$0xff]  ;;  %v606_v58 = vor.u32 %v673_v54, %v603_v55  ;;  %v672_v60 = vld [vmem:[#allocation7 + $0x14] sm:$0xf0]  ;;  %v671_v61 = vld [vmem:[#allocation7 + $0x14] sm:$0xf] }
  0x1f   :  { %v593_v59 = vld [vmem:[#allocation7 + $0x10] sm:$0xf]  ;;  %v595_v62 = vld [vmem:[#allocation7 + $0x18] sm:$0xf0]  ;;  %v585_v4 = vld [vmem:[#allocation7] sm:$0xf] }
  0x20   :  { %216 = vmatpush.bf16.msra.mxu0 %v656_v8  ;;  %v594_v1 = vor.u32 %v672_v60, %v593_v59  ;;  %v598_v3 = vor.u32 %v671_v61, %v595_v62  ;;  %v670_v5 = vld [vmem:[#allocation7 + $0x4] sm:$0xf0]  ;;  %v669_v6 = vld [vmem:[#allocation7 + $0x4] sm:$0xf]  ;;  %v587_v7 = vld [vmem:[#allocation7 + $0x8] sm:$0xf0] }
  0x21   :  { %230 = vmatpush.bf16.msra.mxu1 %v664_v9  ;;  %383 = vmatpush.bf16.msra.mxu2 %v626_v37  ;;  %v586_v9 = vor.u32 %v670_v5, %v585_v4  ;;  %v295_v42 = vld [vmem:[%s889_s4] sm:$0x3]  ;;  %s827_s4 = smov [#allocation8]  }
  0x22   :  { %397 = vmatpush.bf16.msra.mxu3 %v630_v39  ;;  %v298_v44 = vperm.slane %v295_v42, 1  ;;  %s493_s12 = sshll.u32 %s827_s4, 4  ;;  %s494_s12 = int_to_ptr.vmem [resolvable:$true] %s493_s12 }
  0x24   :  { %217 = vmatpush.bf16.msra.mxu0 %v655_v10 }
  0x25   :  { %231 = vmatpush.bf16.msra.mxu1 %v663_v11  ;;  %384 = vmatpush.bf16.msra.mxu2 %v618_v43  ;;  %v590_v11 = vor.u32 %v669_v6, %v587_v7  ;;  %v297_v43 = vperm.slane %v295_v42, 0 }
  0x26   :  { %398 = vmatpush.bf16.msra.mxu3 %v622_v45 }
  0x28   :  { %218 = vmatpush.bf16.msra.mxu0 %v654_v12 }
  0x29   :  { %232 = vmatpush.bf16.msra.mxu1 %v662_v13  ;;  %385 = vmatpush.bf16.msra.mxu2 %v610_v49 }
  0x2a   :  { %399 = vmatpush.bf16.msra.mxu3 %v614_v53 }
  0x2c   :  { %219 = vmatpush.bf16.msra.mxu0 %v653_v14 }
  0x2d   :  { %233 = vmatpush.bf16.msra.mxu1 %v661_v15  ;;  %386 = vmatpush.bf16.msra.mxu2 %v602_v56 }
  0x2e   :  { %400 = vmatpush.bf16.msra.mxu3 %v606_v58 }
  0x2f   :  { %220 = vmatmul.bf16.vlgmr.msra.gmra.mxu0 %v512_v20 }
  0x30   :  { %234 = vmatmul.bf16.vlgmr.msra.gmra.mxu1 %v516_v21 }
  0x31   :  { %387 = vmatpush.bf16.msra.mxu2 %v594_v1 }
  0x32   :  { %401 = vmatpush.bf16.msra.mxu3 %v598_v3 }
  0x35   :  { %388 = vmatpush.bf16.msra.mxu2 %v586_v9 }
  0x36   :  { %402 = vmatpush.bf16.msra.mxu3 %v590_v11 }
  0xac   :  { %v221_v63 = vpop.f32.mrf.mxu0 }
  0xad   :  { %v235_v0 = vpop.f32.mrf.mxu1  ;;  %v222_v2 = vadd.f32 %v693_v57, %v221_v63 }
  0xaf   :  { %v236_v8 = vadd.f32 %v235_v0, %v222_v2 }
  0xb1   :  { %v581_v10 = vmul.f32 -1.442695, %v236_v8 }
  0xb3   :  { %694 = vpow2.f32 %v581_v10 }
  0xb4   :  { %v223_v12 = vpop.f32.mrf.mxu0 }
  0xb5   :  { %v224_v13 = vadd.f32 %v693_v57, %v223_v12  ;;  %v237_v14 = vpop.f32.mrf.mxu1 }
  0xb7   :  { %v238_v15 = vadd.f32 %v237_v14, %v224_v13 }
  0xb9   :  { %v695_v16 = vpop.eup %694  ;;  %v582_v17 = vmul.f32 -1.442695, %v238_v15 }
  0xba   :  { %v246_v18 = vadd.f32 1.0, %v695_v16 }
  0xbb   :  { %696 = vpow2.f32 %v582_v17 }
  0xbc   :  { %698 = vrcp.f32 %v246_v18  ;;  %vm253_vm1 = vweird.f32 %v246_v18  ;;  %v259_v29 = vand.u32 2147483648, %v246_v18  ;;  %v257_v31 = vand.u32 2147483647, %v246_v18 }
  0xbe   :  { %v260_v36 = vor.u32 1.1754944e-38, %v259_v29  ;;  %vm258_vm6 = vcmp.eq.f32.partialorder %v257_v31, 8.507059e+37 }
  0xc1   :  { %v697_v19 = vpop.eup %696 }
  0xc2   :  { %v699_v20 = vpop.eup %698  ;;  %v247_v21 = vadd.f32 1.0, %v697_v19 }
  0xc3   :  { %v249_v22 = vmul.f32 %v699_v20, %v246_v18  ;;  %vm254_vm0 = vweird.f32 %v699_v20 }
  0xc4   :  { %700 = vrcp.f32 %v247_v21  ;;  %v274_v30 = vand.u32 2147483648, %v247_v21  ;;  %v272_v33 = vand.u32 2147483647, %v247_v21  ;;  %vm255_vm3 = vmor %vm253_vm1, %vm254_vm0  ;;  %vm268_vm4 = vweird.f32 %v247_v21 }
  0xc5   :  { %v250_v23 = vsub.f32 1.0, %v249_v22 }
  0xc6   :  { %v275_v37 = vor.u32 1.1754944e-38, %v274_v30  ;;  %vm273_vm7 = vcmp.eq.f32.partialorder %v272_v33, 8.507059e+37 }
  0xc7   :  { %v251_v24 = vmul.f32 %v699_v20, %v250_v23 }
  0xc9   :  { %v252_v27 = vadd.f32 %v699_v20, %v251_v24 }
  0xca   :  { %v701_v25 = vpop.eup %700 }
  0xcb   :  { %v264_v26 = vmul.f32 %v701_v25, %v247_v21  ;;  %vm269_vm2 = vweird.f32 %v701_v25  ;;  %v256_v34 = vsel %vm255_vm3, %v699_v20, %v252_v27 }
  0xcc   :  { %vm270_vm5 = vmor %vm268_vm4, %vm269_vm2  ;;  %v261_v39 = vsel %vm258_vm6, %v260_v36, %v256_v34 }
  0xcd   :  { %v265_v28 = vsub.f32 1.0, %v264_v26 }
  0xcf   :  { %v266_v32 = vmul.f32 %v701_v25, %v265_v28 }
  0xd1   :  { %v267_v35 = vadd.f32 %v701_v25, %v266_v32 }
  0xd3   :  { %v271_v38 = vsel %vm270_vm5, %v701_v25, %v267_v35 }
  0xd4   :  { %v276_v40 = vsel %vm273_vm7, %v275_v37, %v271_v38 }
  0xd5   :  { %v278_v41 = vpack.c.bf16 %v276_v40, %v261_v39 }
  0xd7   :  { %389 = vmatmul.bf16.vlgmr.msra.gmra.mxu2 %v278_v41  ;;  %403 = vmatmul.bf16.vlgmr.msra.gmra.mxu3 %v278_v41 }
 0x15a   :  { %v390_v45 = vpop.f32.mrf.mxu2  ;;  %v404_v46 = vpop.f32.mrf.mxu3 }
 0x15b   :  { %v391_v47 = vadd.f32 %v390_v45, %v297_v43  ;;  %v405_v48 = vadd.f32 %v404_v46, %v298_v44 }
 0x15d   :  { %v647_v49 = vmul.f32 -1.442695, %v391_v47  ;;  %v648_v50 = vmul.f32 -1.442695, %v405_v48 }
 0x15f   :  { %702 = vpow2.f32 %v647_v49 }
 0x160   :  { %704 = vpow2.f32 %v648_v50 }
 0x162   :  { %v392_v51 = vpop.f32.mrf.mxu2  ;;  %v406_v52 = vpop.f32.mrf.mxu3 }
 0x163   :  { %v393_v53 = vadd.f32 %v392_v51, %v297_v43  ;;  %v407_v54 = vadd.f32 %v406_v52, %v298_v44 }
 0x165   :  { %v703_v55 = vpop.eup %702  ;;  %v649_v56 = vmul.f32 -1.442695, %v393_v53  ;;  %v650_v59 = vmul.f32 -1.442695, %v407_v54 }
 0x166   :  { %v705_v57 = vpop.eup %704  ;;  %v421_v58 = vadd.f32 1.0, %v703_v55 }
 0x167   :  { %v422_v60 = vadd.f32 1.0, %v705_v57  ;;  %706 = vpow2.f32 %v649_v56 }
 0x168   :  { %708 = vrcp.f32 %v421_v58  ;;  %v434_v7 = vand.u32 2147483647, %v421_v58  ;;  %v436_v8 = vand.u32 2147483648, %v421_v58  ;;  %vm430_vm10 = vweird.f32 %v421_v58 }
 0x169   :  { %710 = vrcp.f32 %v422_v60  ;;  %v451_v10 = vand.u32 2147483648, %v422_v60  ;;  %v449_v12 = vand.u32 2147483647, %v422_v60  ;;  %vm445_vm12 = vweird.f32 %v422_v60 }
 0x16a   :  { %712 = vpow2.f32 %v650_v59  ;;  %v437_v15 = vor.u32 1.1754944e-38, %v436_v8  ;;  %vm435_vm13 = vcmp.eq.f32.partialorder %v434_v7, 8.507059e+37 }
 0x16b   :  { %v452_v19 = vor.u32 1.1754944e-38, %v451_v10  ;;  %vm450_vm15 = vcmp.eq.f32.partialorder %v449_v12, 8.507059e+37 }
 0x16d   :  { %v707_v61 = vpop.eup %706 }
 0x16e   :  { %v709_v62 = vpop.eup %708  ;;  %v423_v63 = vadd.f32 1.0, %v707_v61 }
 0x16f   :  { %v711_v0 = vpop.eup %710  ;;  %v426_v1 = vmul.f32 %v709_v62, %v421_v58  ;;  %vm431_vm8 = vweird.f32 %v709_v62 }
 0x170   :  { %v713_v2 = vpop.eup %712  ;;  %v441_v3 = vmul.f32 %v711_v0, %v422_v60  ;;  %714 = vrcp.f32 %v423_v63  ;;  %vm446_vm9 = vweird.f32 %v711_v0  ;;  %vm432_vm11 = vmor %vm430_vm10, %vm431_vm8  ;;  %v466_v28 = vand.u32 2147483648, %v423_v63 }
 0x171   :  { %v427_v4 = vsub.f32 1.0, %v426_v1  ;;  %v424_v5 = vadd.f32 1.0, %v713_v2  ;;  %vm447_vm14 = vmor %vm445_vm12, %vm446_vm9  ;;  %v464_v30 = vand.u32 2147483647, %v423_v63  ;;  %vm460_vm1 = vweird.f32 %v423_v63 }
 0x172   :  { %v442_v6 = vsub.f32 1.0, %v441_v3  ;;  %v467_v36 = vor.u32 1.1754944e-38, %v466_v28 }
 0x173   :  { %716 = vrcp.f32 %v424_v5  ;;  %v428_v9 = vmul.f32 %v709_v62, %v427_v4  ;;  %v481_v32 = vand.u32 2147483648, %v424_v5  ;;  %v479_v34 = vand.u32 2147483647, %v424_v5 }
 0x174   :  { %v443_v11 = vmul.f32 %v711_v0, %v442_v6  ;;  %vm465_vm4 = vcmp.eq.f32.partialorder %v464_v30, 8.507059e+37  ;;  %vm475_vm5 = vweird.f32 %v424_v5 }
 0x175   :  { %v429_v13 = vadd.f32 %v709_v62, %v428_v9  ;;  %v482_v39 = vor.u32 1.1754944e-38, %v481_v32  ;;  %vm480_vm7 = vcmp.eq.f32.partialorder %v479_v34, 8.507059e+37 }
 0x176   :  { %v715_v14 = vpop.eup %714  ;;  %v444_v16 = vadd.f32 %v711_v0, %v443_v11 }
 0x177   :  { %v456_v17 = vmul.f32 %v715_v14, %v423_v63  ;;  %v433_v18 = vsel %vm432_vm11, %v709_v62, %v429_v13  ;;  %vm461_vm0 = vweird.f32 %v715_v14 }
 0x178   :  { %v438_v20 = vsel %vm435_vm13, %v437_v15, %v433_v18  ;;  %v448_v21 = vsel %vm447_vm14, %v711_v0, %v444_v16  ;;  %vm462_vm2 = vmor %vm460_vm1, %vm461_vm0 }
 0x179   :  { %v717_v22 = vpop.eup %716  ;;  %v457_v23 = vsub.f32 1.0, %v456_v17  ;;  %v453_v24 = vsel %vm450_vm15, %v452_v19, %v448_v21 }
 0x17a   :  { %v471_v25 = vmul.f32 %v717_v22, %v424_v5  ;;  %v485_v26 = vpack.c.bf16 %v453_v24, %v438_v20  ;;  %vm476_vm3 = vweird.f32 %v717_v22 }
 0x17b   :  { %v458_v27 = vmul.f32 %v715_v14, %v457_v23  ;;  %vm477_vm6 = vmor %vm475_vm5, %vm476_vm3 }
 0x17c   :  { %v472_v29 = vsub.f32 1.0, %v471_v25  ;;  %487 = vst [vmem:[#allocation8] sm:$0xff] %v485_v26 }
 0x17d   :  { %v459_v31 = vadd.f32 %v715_v14, %v458_v27 }
 0x17e   :  { %v473_v33 = vmul.f32 %v717_v22, %v472_v29 }
 0x17f   :  { %v463_v35 = vsel %vm462_vm2, %v715_v14, %v459_v31 }
 0x180   :  { %v474_v37 = vadd.f32 %v717_v22, %v473_v33  ;;  %v468_v38 = vsel %vm465_vm4, %v467_v36, %v463_v35 }
 0x182   :  { %v478_v40 = vsel %vm477_vm6, %v717_v22, %v474_v37 }
 0x183   :  { %v483_v41 = vsel %vm480_vm7, %v482_v39, %v478_v40 }
 0x184   :  { %v486_v42 = vpack.c.bf16 %v483_v41, %v468_v38 }
 0x186   :  { %488 = vst [vmem:[#allocation8 + $0x8] sm:$0xff] %v486_v42 }
 0x187   :  { %501 = dma.vmem_to_hbm [thread:$0]  %s494_s12, 256, %s496_s15, [#allocation4], %s824_s30, %s824_s30, %s825_s6  }
 0x188   :  { %818 = dma.done.wait [#allocation4], 256  }
 0x189   :  { %819 = vsyncadd [#allocation4], 4294967040 }
 0x18a   :  { %506 = vsyncpa [#allocation3], 1 }
 0x18b   :  { %507 = vsyncpa [#allocation6], 1 }
 0x18c   :  { %508 = vsyncpa [#allocation4], 1 }

</bundles_post_ra>
